<compile_context>
chip_gen: v7x
topology: tpu7x:2x2x1
jax: 0.10.0
libtpu: 0.0.40
codegen_flags: <defaults>
</compile_context>

<pallas_src>
import functools

import jax
import jax.numpy as jnp
from jax.experimental import pallas as pl
from jax.experimental.pallas import tpu as pltpu


_NEG_PAD = -1e30          # padding along L: exp(pad - row_max) == 0 for real rows.
_MXU_NPOS_THRESHOLD = 16  # above this, use the mask-matmul path for the final step.


def _rrd_kernel(score_ref, out_ref, m_ref, r_ref, *, n_pos):
    """Processes one (TB, TL) score tile.  The L-tile grid axis is walked in
    reverse (rightmost tile first), carrying a running suffix max / suffix
    sum-of-exp per row in VMEM scratch.  At the last step (the leftmost tile,
    which holds all n_pos "positive" positions) the per-row loss is emitted."""
    k = pl.program_id(1)
    nk = pl.num_programs(1)

    s = score_ref[...]                                   # (TB, TL) f32
    tb, tl = s.shape

    @pl.when(k == 0)
    def _():
        m_ref[...] = jnp.full(m_ref.shape, -jnp.inf, jnp.float32)
        r_ref[...] = jnp.zeros(r_ref.shape, jnp.float32)

    m_prev = m_ref[...]                                  # (TB, 1)
    r_prev = r_ref[...]                                  # (TB, 1)

    tile_max = jnp.max(s, axis=1, keepdims=True)         # (TB, 1)
    m_new = jnp.maximum(m_prev, tile_max)
    alpha = jnp.exp(m_prev - m_new)                      # carry rescale (0 at k==0)
    e = jnp.exp(s - m_new)                               # (TB, TL), values in (0, 1]
    tile_sum = jnp.sum(e, axis=1, keepdims=True)         # (TB, 1)

    m_ref[...] = m_new
    r_ref[...] = r_prev * alpha + tile_sum

    @pl.when(k == nk - 1)
    def _():
        # This is the first (forward-order) tile: positions 0..n_pos-1 live here.
        col = jax.lax.broadcasted_iota(jnp.int32, (tb, tl), 1)
        carry = r_prev * alpha                           # suffix sum over tiles to the right

        # sum_{i<n_pos} score[b, i]   (full-width masked reduce, no lane slicing)
        s_pos_sum = jnp.sum(jnp.where(col < n_pos, s, 0.0), axis=1, keepdims=True)

        # sum_{i<n_pos} log( carry + sum_{j>=i, j in tile} exp(score[b, j] - m_new) )
        # TODO(synk): carry+suffix can underflow to 0 (-> -inf) if every score at
        # positions >= i is ~88+ below the row max; torch.logcumsumexp stays
        # finite in that (practically unreachable) extreme.
        if n_pos <= _MXU_NPOS_THRESHOLD:
            # Small, static n_pos -> unrolled full-width masked VPU reductions.
            log_sum = jnp.zeros((tb, 1), jnp.float32)
            for i in range(n_pos):
                within = jnp.sum(jnp.where(col >= i, e, 0.0), axis=1, keepdims=True)
                log_sum = log_sum + jnp.log(carry + within)
        else:
            # Large n_pos -> one (TL, np_pad) 0/1 suffix mask matmul on the MXU:
            # suffix[b, i] = sum_{j >= i} e[b, j].
            np_pad = (n_pos + 127) // 128 * 128
            row_j = jax.lax.broadcasted_iota(jnp.int32, (tl, np_pad), 0)
            col_i = jax.lax.broadcasted_iota(jnp.int32, (tl, np_pad), 1)
            mask = (row_j >= col_i).astype(jnp.float32)
            suffix = jnp.dot(e, mask, preferred_element_type=jnp.float32)   # (TB, np_pad)
            totals = carry + suffix
            pos = jax.lax.broadcasted_iota(jnp.int32, (tb, np_pad), 1)
            log_sum = jnp.sum(jnp.where(pos < n_pos, jnp.log(totals), 0.0),
                              axis=1, keepdims=True)

        # loss_row = sum_{i<n_pos} ( (m_new + log total_i) - score[b, i] )
        loss_rows = n_pos * m_new + log_sum - s_pos_sum          # (TB, 1)
        out_ref[...] = jnp.broadcast_to(loss_rows, out_ref.shape)  # lane-dense store


def _round_up(x, m):
    return (x + m - 1) // m * m


def rrd_loss(score, *, n_pos, temperature=1.0):
    """Pallas implementation of RRD.forward(score).  `temperature` is kept for
    API parity with the PyTorch module but (as in the reference forward) unused.
    `n_pos` is an explicit argument (it is set externally on the module in the
    original repo)."""
    del temperature
    score = jnp.asarray(score, jnp.float32)
    B, L = score.shape
    if not (0 < n_pos <= L):
        raise ValueError(f"n_pos={n_pos} must be in (0, L={L}]")

    # ---- tile sizes: lane-dense, ~1MB blocks, VMEM-bounded ----
    TB = min(_round_up(B, 8), 256)        # batch-tile rows
    TL = min(_round_up(L, 128), 1024)     # list-tile width (multiple of 128)
    if n_pos > TL:                        # all n_pos positions must fit in tile 0
        TL = _round_up(n_pos, 128)
    Bp = _round_up(B, TB)
    Lp = _round_up(L, TL)
    nb, nk = Bp // TB, Lp // TL

    if (Bp, Lp) != (B, L):
        # Padded rows are dropped in the wrapper; padded columns contribute
        # exp(_NEG_PAD - max) == 0 to every suffix sum.
        score = jnp.pad(score, ((0, Bp - B), (0, Lp - L)),
                        constant_values=_NEG_PAD)

    kernel = functools.partial(_rrd_kernel, n_pos=int(n_pos))

    out = pl.pallas_call(
        kernel,
        out_shape=jax.ShapeDtypeStruct((Bp, 128), jnp.float32),
        grid_spec=pltpu.PrefetchScalarGridSpec(
            num_scalar_prefetch=0,
            grid=(nb, nk),
            in_specs=[
                # L axis walked in reverse so the suffix carry is valid.
                pl.BlockSpec((TB, TL), lambda b, k: (b, nk - 1 - k)),
            ],
            out_specs=pl.BlockSpec((TB, 128), lambda b, k: (b, 0)),
            scratch_shapes=[
                pltpu.VMEM((TB, 1), jnp.float32),   # running suffix max
                pltpu.VMEM((TB, 1), jnp.float32),   # running suffix sum of exp
            ],
        ),
        compiler_params=pltpu.CompilerParams(
            dimension_semantics=("parallel", "arbitrary"),
            vmem_limit_bytes=32 * 1024 * 1024,
        ),
    )(score)

    return jnp.mean(out[:B, 0])


def _rrd_ref(score, n_pos):
    """Pure-JAX reference (mirrors the PyTorch forward exactly)."""
    score = score.astype(jnp.float32)
    s = score - jnp.max(score, axis=1, keepdims=True)
    y = jax.lax.cumlogsumexp(s, axis=1, reverse=True)   # flip . logcumsumexp . flip
    loss = y[:, :n_pos] - s[:, :n_pos]
    return jnp.mean(jnp.sum(loss, axis=1))


if __name__ == "__main__":
    # 1) small single-tile case (VPU path)
    key = jax.random.PRNGKey(0)
    B, L, N_POS = 2, 16, 4
    score = jax.random.normal(key, (B, L), dtype=jnp.float32)
    out = jax.block_until_ready(rrd_loss(score, n_pos=N_POS))
    ref = _rrd_ref(score, N_POS)
    assert jnp.allclose(out, ref, rtol=1e-4, atol=1e-5), (out, ref)

    # 2) multi-L-tile case (reversed grid + carried suffix, VPU path)
    B2, L2, N2 = 5, 2500, 7
    score2 = jax.random.normal(jax.random.PRNGKey(1), (B2, L2), dtype=jnp.float32)
    out2 = jax.block_until_ready(rrd_loss(score2, n_pos=N2))
    ref2 = _rrd_ref(score2, N2)
    assert jnp.allclose(out2, ref2, rtol=1e-4, atol=1e-4), (out2, ref2)

    # 3) large n_pos (MXU mask-matmul path) + multi-tile
    B3, L3, N3 = 6, 2000, 200
    score3 = jax.random.normal(jax.random.PRNGKey(2), (B3, L3), dtype=jnp.float32)
    out3 = jax.block_until_ready(rrd_loss(score3, n_pos=N3))
    ref3 = _rrd_ref(score3, N3)
    assert jnp.allclose(out3, ref3, rtol=5e-3, atol=5e-2), (out3, ref3)

    print("KERNEL_OK")
</pallas_src>

<mosaic_0001>
module attributes {stable_mosaic.version = 11 : i64} {
  func.func @_rrd_kernel(%arg0: i32, %arg1: i32, %arg2: memref<8x128xf32, #tpu.memory_space<vmem>>, %arg3: memref<8x128xf32, #tpu.memory_space<vmem>>, %arg4: memref<8x1xf32, #tpu.memory_space<vmem>>, %arg5: memref<8x1xf32, #tpu.memory_space<vmem>>) attributes {dimension_semantics = [#tpu.dimension_semantics<parallel>, #tpu.dimension_semantics<arbitrary>], iteration_bounds = array<i64: 1, 1>, scalar_prefetch = 0 : i64, scratch_operands = 2 : i64, tpu.core_type = #tpu.core_type<tc>, window_params = [{transform_indices = @transform_0, window_bounds = array<i64: 8, 128>}, {transform_indices = @transform_1, window_bounds = array<i64: 8, 128>}]} {
    %c0 = arith.constant 0 : index
    %c0_0 = arith.constant 0 : index
    %0 = vector.load %arg2[%c0, %c0_0] : memref<8x128xf32, #tpu.memory_space<vmem>>, vector<8x128xf32>
    %c0_i32 = arith.constant 0 : i32
    %1 = arith.cmpi eq, %arg1, %c0_i32 : i32
    %2 = arith.extui %1 : i1 to i32
    %c0_i32_1 = arith.constant 0 : i32
    %3 = arith.cmpi ne, %2, %c0_i32_1 : i32
    scf.if %3 {
      %cst_13 = arith.constant 0xFF800000 : f32
      %23 = vector.broadcast %cst_13 : f32 to vector<8x1xf32>
      %c0_14 = arith.constant 0 : index
      %c0_15 = arith.constant 0 : index
      %24 = vector.load %arg4[%c0_14, %c0_15] : memref<8x1xf32, #tpu.memory_space<vmem>>, vector<8x1xf32>
      tpu.vector_store %arg4[%c0_14, %c0_15], %23 {strides = array<i32>} : memref<8x1xf32, #tpu.memory_space<vmem>>, vector<8x1xf32>,
      %cst_16 = arith.constant 0.000000e+00 : f32
      %25 = vector.broadcast %cst_16 : f32 to vector<8x1xf32>
      %c0_17 = arith.constant 0 : index
      %c0_18 = arith.constant 0 : index
      %26 = vector.load %arg5[%c0_17, %c0_18] : memref<8x1xf32, #tpu.memory_space<vmem>>, vector<8x1xf32>
      tpu.vector_store %arg5[%c0_17, %c0_18], %25 {strides = array<i32>} : memref<8x1xf32, #tpu.memory_space<vmem>>, vector<8x1xf32>,
    } else {
    }
    %c0_2 = arith.constant 0 : index
    %c0_3 = arith.constant 0 : index
    %4 = vector.load %arg4[%c0_2, %c0_3] : memref<8x1xf32, #tpu.memory_space<vmem>>, vector<8x1xf32>
    %c0_4 = arith.constant 0 : index
    %c0_5 = arith.constant 0 : index
    %5 = vector.load %arg5[%c0_4, %c0_5] : memref<8x1xf32, #tpu.memory_space<vmem>>, vector<8x1xf32>
    %cst = arith.constant dense<0xFF800000> : vector<8xf32>
    %6 = vector.multi_reduction <maximumf>, %0, %cst [1] : vector<8x128xf32> to vector<8xf32>
    %7 = vector.shape_cast %6 : vector<8xf32> to vector<8x1xf32>
    %8 = arith.maximumf %4, %7 : vector<8x1xf32>
    %9 = arith.subf %4, %8 : vector<8x1xf32>
    %10 = math.exp %9 : vector<8x1xf32>
    %11 = vector.broadcast %8 : vector<8x1xf32> to vector<8x128xf32>
    %12 = arith.subf %0, %11 : vector<8x128xf32>
    %13 = math.exp %12 : vector<8x128xf32>
    %cst_6 = arith.constant dense<0.000000e+00> : vector<8xf32>
    %14 = vector.multi_reduction <add>, %13, %cst_6 [1] : vector<8x128xf32> to vector<8xf32>
    %15 = vector.shape_cast %14 : vector<8xf32> to vector<8x1xf32>
    %c0_7 = arith.constant 0 : index
    %c0_8 = arith.constant 0 : index
    %16 = vector.load %arg4[%c0_7, %c0_8] : memref<8x1xf32, #tpu.memory_space<vmem>>, vector<8x1xf32>
    tpu.vector_store %arg4[%c0_7, %c0_8], %8 {strides = array<i32>} : memref<8x1xf32, #tpu.memory_space<vmem>>, vector<8x1xf32>,
    %17 = arith.mulf %5, %10 : vector<8x1xf32>
    %18 = arith.addf %17, %15 : vector<8x1xf32>
    %c0_9 = arith.constant 0 : index
    %c0_10 = arith.constant 0 : index
    %19 = vector.load %arg5[%c0_9, %c0_10] : memref<8x1xf32, #tpu.memory_space<vmem>>, vector<8x1xf32>
    tpu.vector_store %arg5[%c0_9, %c0_10], %18 {strides = array<i32>} : memref<8x1xf32, #tpu.memory_space<vmem>>, vector<8x1xf32>,
    %c0_i32_11 = arith.constant 0 : i32
    %20 = arith.cmpi eq, %arg1, %c0_i32_11 : i32
    %21 = arith.extui %20 : i1 to i32
    %c0_i32_12 = arith.constant 0 : i32
    %22 = arith.cmpi ne, %21, %c0_i32_12 : i32
    scf.if %22 {
      %23 = tpu.iota {dimensions = array<i32: 1>} : vector<8x128xi32>
      %24 = arith.mulf %5, %10 : vector<8x1xf32>
      %c4_i32 = arith.constant 4 : i32
      %25 = vector.broadcast %c4_i32 : i32 to vector<8x128xi32>
      %26 = arith.cmpi slt, %23, %25 : vector<8x128xi32>
      %cst_13 = arith.constant 0.000000e+00 : f32
      %27 = vector.broadcast %cst_13 : f32 to vector<8x128xf32>
      %28 = arith.select %26, %0, %27 : vector<8x128xi1>, vector<8x128xf32>
      %cst_14 = arith.constant dense<0.000000e+00> : vector<8xf32>
      %29 = vector.multi_reduction <add>, %28, %cst_14 [1] : vector<8x128xf32> to vector<8xf32>
      %30 = vector.shape_cast %29 : vector<8xf32> to vector<8x1xf32>
      %cst_15 = arith.constant 0.000000e+00 : f32
      %31 = vector.broadcast %cst_15 : f32 to vector<8x1xf32>
      %c0_i32_16 = arith.constant 0 : i32
      %32 = vector.broadcast %c0_i32_16 : i32 to vector<8x128xi32>
      %33 = arith.cmpi sge, %23, %32 : vector<8x128xi32>
      %cst_17 = arith.constant 0.000000e+00 : f32
      %34 = vector.broadcast %cst_17 : f32 to vector<8x128xf32>
      %35 = arith.select %33, %13, %34 : vector<8x128xi1>, vector<8x128xf32>
      %cst_18 = arith.constant dense<0.000000e+00> : vector<8xf32>
      %36 = vector.multi_reduction <add>, %35, %cst_18 [1] : vector<8x128xf32> to vector<8xf32>
      %37 = vector.shape_cast %36 : vector<8xf32> to vector<8x1xf32>
      %38 = arith.addf %24, %37 : vector<8x1xf32>
      %39 = math.log %38 : vector<8x1xf32>
      %40 = arith.addf %31, %39 : vector<8x1xf32>
      %c1_i32 = arith.constant 1 : i32
      %41 = vector.broadcast %c1_i32 : i32 to vector<8x128xi32>
      %42 = arith.cmpi sge, %23, %41 : vector<8x128xi32>
      %cst_19 = arith.constant 0.000000e+00 : f32
      %43 = vector.broadcast %cst_19 : f32 to vector<8x128xf32>
      %44 = arith.select %42, %13, %43 : vector<8x128xi1>, vector<8x128xf32>
      %cst_20 = arith.constant dense<0.000000e+00> : vector<8xf32>
      %45 = vector.multi_reduction <add>, %44, %cst_20 [1] : vector<8x128xf32> to vector<8xf32>
      %46 = vector.shape_cast %45 : vector<8xf32> to vector<8x1xf32>
      %47 = arith.addf %24, %46 : vector<8x1xf32>
      %48 = math.log %47 : vector<8x1xf32>
      %49 = arith.addf %40, %48 : vector<8x1xf32>
      %c2_i32 = arith.constant 2 : i32
      %50 = vector.broadcast %c2_i32 : i32 to vector<8x128xi32>
      %51 = arith.cmpi sge, %23, %50 : vector<8x128xi32>
      %cst_21 = arith.constant 0.000000e+00 : f32
      %52 = vector.broadcast %cst_21 : f32 to vector<8x128xf32>
      %53 = arith.select %51, %13, %52 : vector<8x128xi1>, vector<8x128xf32>
      %cst_22 = arith.constant dense<0.000000e+00> : vector<8xf32>
      %54 = vector.multi_reduction <add>, %53, %cst_22 [1] : vector<8x128xf32> to vector<8xf32>
      %55 = vector.shape_cast %54 : vector<8xf32> to vector<8x1xf32>
      %56 = arith.addf %24, %55 : vector<8x1xf32>
      %57 = math.log %56 : vector<8x1xf32>
      %58 = arith.addf %49, %57 : vector<8x1xf32>
      %c3_i32 = arith.constant 3 : i32
      %59 = vector.broadcast %c3_i32 : i32 to vector<8x128xi32>
      %60 = arith.cmpi sge, %23, %59 : vector<8x128xi32>
      %cst_23 = arith.constant 0.000000e+00 : f32
      %61 = vector.broadcast %cst_23 : f32 to vector<8x128xf32>
      %62 = arith.select %60, %13, %61 : vector<8x128xi1>, vector<8x128xf32>
      %cst_24 = arith.constant dense<0.000000e+00> : vector<8xf32>
      %63 = vector.multi_reduction <add>, %62, %cst_24 [1] : vector<8x128xf32> to vector<8xf32>
      %64 = vector.shape_cast %63 : vector<8xf32> to vector<8x1xf32>
      %65 = arith.addf %24, %64 : vector<8x1xf32>
      %66 = math.log %65 : vector<8x1xf32>
      %67 = arith.addf %58, %66 : vector<8x1xf32>
      %cst_25 = arith.constant 4.000000e+00 : f32
      %68 = vector.broadcast %cst_25 : f32 to vector<8x1xf32>
      %69 = arith.mulf %68, %8 : vector<8x1xf32>
      %70 = arith.addf %69, %67 : vector<8x1xf32>
      %71 = arith.subf %70, %30 : vector<8x1xf32>
      %72 = vector.shape_cast %71 : vector<8x1xf32> to vector<8x1xf32>
      %73 = vector.broadcast %72 : vector<8x1xf32> to vector<8x128xf32>
      %c0_26 = arith.constant 0 : index
      %c0_27 = arith.constant 0 : index
      %74 = vector.load %arg3[%c0_26, %c0_27] : memref<8x128xf32, #tpu.memory_space<vmem>>, vector<8x128xf32>
      tpu.vector_store %arg3[%c0_26, %c0_27], %73 {strides = array<i32>} : memref<8x128xf32, #tpu.memory_space<vmem>>, vector<8x128xf32>,
    } else {
    }
    return
  }
  func.func @transform_0(%arg0: i32, %arg1: i32) -> (i32, i32) {
    %c0_i32 = arith.constant 0 : i32
    %0 = arith.subi %c0_i32, %arg1 : i32
    %c0_i32_0 = arith.constant 0 : i32
    return %arg0, %0 : i32, i32
  }
  func.func @transform_1(%arg0: i32, %arg1: i32) -> (i32, i32) {
    %c0_i32 = arith.constant 0 : i32
    %c0_i32_0 = arith.constant 0 : i32
    return %arg0, %c0_i32 : i32, i32
  }
}

</mosaic_0001>

<bundles_post_ra>
// kernel: tpu_custom_call.1
= control target key start
LH: loop header
LB: loop body
LE: loop exit
PB: predicated region body
PF: predicated region fallthrough
CT: control target
= control target key end

     0   :  { %6 = vsyncpa [#allocation5], 0  ;;  %s233_s0 = inlined_call_operand.hbm [shape: f32[8,128], index: 0, kind: input, shape index: {}]   ;;  %s234_s1 = inlined_call_operand.hbm [shape: f32[8,128], index: 1, kind: output, shape index: {}]  }
   0x1   :  { %7 = vsyncpa [#allocation6], 0  ;;  %s190_s6 = smov [#allocation4]   ;;  %s142_s10 = scalar_lea.hbm %s233_s0, 128 }
   0x2   :  { %s17_s7 = sshll.u32 %s190_s6, 4  ;;  %p143_p0 = scmp.ne.s32.totalorder %s233_s0, %s142_s10  ;;  %s18_s7 = int_to_ptr.vmem [resolvable:$true] %s17_s7 }
   0x3   :  { %p146_p1 = scmp.lt.u32.totalorder %s142_s10, %s233_s0 }
   0x5   :  { %p148_p2 = pnand %p146_p1, %p143_p0 }
   0x7   :  { %151 = shalt.err (!%p148_p2)
}
   0x8   :  { %s152_s15 = scalar_lea.vmem %s18_s7, 128  ;;  %p157_p4 = scmp.lt.s32.totalorder %s18_s7, %s18_s7 }
   0x9   :  { %p153_p3 = scmp.ne.s32.totalorder %s18_s7, %s152_s15  ;;  %p158_p5 = scmp.lt.s32.totalorder %s152_s15, %s152_s15 }
   0xb   :  { %p159_p6 = por %p158_p5, %p157_p4 }
   0xd   :  { %p160_p7 = pnand %p159_p6, %p153_p3 }
   0xf   :  { %163 = shalt.err (!%p160_p7)
}
  0x10   :  { %20 = dma.hbm_to_vmem [thread:$0]  %s233_s0, 128, %s18_s7, [#allocation5]  }
  0x11   :  { %186 = dma.done.wait [#allocation5], 128  }
  0x12   :  { %187 = vsyncadd [#allocation5], 4294967168  ;;  %vm30_vm0 = vcmask 7168   ;;  %v191_v0 = vmov -inf   ;;  %v192_v1 = vmov 0.0   ;;  %v25_v2 = vld [vmem:[#allocation4] sm:$0xff]  ;;  %v59_v11 = vlaneseq }
  0x13   :  { %31 = vst.msk [vmem:[#allocation2] sm:$0xff] %vm30_vm0, %v191_v0  ;;  %32 = vst.msk [vmem:[#allocation3] sm:$0xff] %vm30_vm0, %v192_v1  ;;  %35 = vmax.xlane.f32.xlu0 %v25_v2  ;;  %v193_v3 = vmov 0   ;;  %s194_s0 = smov [#allocation7]  }
  0x14   :  { %128 = vset.pattern.permute.xlu0 %v193_v3  ;;  %129 = vset.pattern.permute.xlu1 %v193_v3  ;;  %v60_v12 = vand.u32 127, %v59_v11  ;;  %s112_s18 = sshll.u32 %s194_s0, 4  ;;  %s113_s18 = int_to_ptr.vmem [resolvable:$true] %s112_s18 }
  0x15   :  { %s164_s19 = scalar_lea.vmem %s113_s18, 128  ;;  %p169_p9 = scmp.lt.s32.totalorder %s113_s18, %s113_s18 }
  0x16   :  { %vm73_vm1 = vcmp.ge.s32.totalorder %v60_v12, 1  ;;  %vm81_vm2 = vcmp.ge.s32.totalorder %v60_v12, 2  ;;  %vm89_vm3 = vcmp.ge.s32.totalorder %v60_v12, 3  ;;  %vm61_vm4 = vcmp.lt.s32.totalorder %v60_v12, 4  ;;  %p165_p8 = scmp.ne.s32.totalorder %s113_s18, %s164_s19  ;;  %p170_p10 = scmp.lt.s32.totalorder %s164_s19, %s164_s19 }
  0x17   :  { %v62_v17 = vsel %vm61_vm4, %v25_v2, 0.0 }
  0x18   :  { %p171_p11 = por %p170_p10, %p169_p9 }
  0x1a   :  { %v33_v4 = vld [vmem:[#allocation2] sm:$0xff]  ;;  %v34_v20 = vld [vmem:[#allocation3] sm:$0xff]  ;;  %p172_p12 = pnand %p171_p11, %p165_p8 }
  0xa0   :  { %v36_v5 = vpop.xlane.xlu0 %35 }
  0xa1   :  { %v37_v6 = vmax.f32 %v33_v4, %v36_v5 }
  0xa3   :  { %v38_v7 = vsub.f32 %v33_v4, %v37_v6  ;;  %52 = vst.msk [vmem:[#allocation2] sm:$0xff] %vm30_vm0, %v37_v6  ;;  %43 = vperm.xlu0 %128, %v37_v6   ;;  %v97_v44 = vmul.f32 4.0, %v37_v6 }
  0xa5   :  { %v39_v18 = vmul.f32 1.442695, %v38_v7 }
 0x122   :  { %v44_v8 = vpop.permute.xlu0 %43 }
 0x123   :  { %v46_v9 = vsub.f32 %v25_v2, %v44_v8 }
 0x125   :  { %v47_v10 = vmul.f32 1.442695, %v46_v9 }
 0x127   :  { %130 = vpow2.f32 %v47_v10 }
 0x128   :  { %132 = vpow2.f32 %v39_v18 }
 0x131   :  { %v131_v13 = vpop.eup %130 }
 0x132   :  { %67 = vadd.xlane.f32.xlu1 %v131_v13  ;;  %v74_v14 = vsel %vm73_vm1, %v131_v13, 0.0  ;;  %v82_v15 = vsel %vm81_vm2, %v131_v13, 0.0  ;;  %v90_v16 = vsel %vm89_vm3, %v131_v13, 0.0  ;;  %v133_v19 = vpop.eup %132 }
 0x133   :  { %v53_v22 = vmul.f32 %v133_v19, %v34_v20 }
 0x136   :  { %75 = vadd.xlane.f32.xlu1 %v74_v14 }
 0x13a   :  { %83 = vadd.xlane.f32.xlu1 %v82_v15 }
 0x13e   :  { %91 = vadd.xlane.f32.xlu1 %v90_v16 }
 0x142   :  { %63 = vadd.xlane.f32.xlu1 %v62_v17 }
 0x146   :  { %49 = vadd.xlane.f32.xlu1 %v131_v13 }
 0x1bf   :  { %v68_v21 = vpop.xlane.xlu1 %67 }
 0x1c0   :  { %v69_v24 = vadd.f32 %v68_v21, %v53_v22 }
 0x1c3   :  { %v76_v23 = vpop.xlane.xlu1 %75 }
 0x1c4   :  { %v77_v25 = vadd.f32 %v76_v23, %v53_v22 }
 0x1c6   :  { %134 = vlog2.f32 %v77_v25 }
 0x1c7   :  { %v84_v26 = vpop.xlane.xlu1 %83  ;;  %136 = vlog2.f32 %v69_v24 }
 0x1c8   :  { %v85_v27 = vadd.f32 %v84_v26, %v53_v22 }
 0x1ca   :  { %138 = vlog2.f32 %v85_v27 }
 0x1cb   :  { %v92_v28 = vpop.xlane.xlu1 %91 }
 0x1cc   :  { %v93_v29 = vadd.f32 %v92_v28, %v53_v22 }
 0x1ce   :  { %140 = vlog2.f32 %v93_v29 }
 0x1cf   :  { %v64_v30 = vpop.xlane.xlu1 %63 }
 0x1d0   :  { %v135_v31 = vpop.eup %134 }
 0x1d1   :  { %v137_v32 = vpop.eup %136  ;;  %v79_v33 = vmul.f32 0.6931472, %v135_v31 }
 0x1d2   :  { %v71_v37 = vmul.f32 0.6931472, %v137_v32 }
 0x1d3   :  { %v50_v34 = vpop.xlane.xlu1 %49 }
 0x1d4   :  { %v139_v35 = vpop.eup %138  ;;  %v54_v36 = vadd.f32 %v53_v22, %v50_v34  ;;  %v80_v39 = vadd.f32 %v79_v33, %v71_v37 }
 0x1d5   :  { %v87_v38 = vmul.f32 0.6931472, %v139_v35 }
 0x1d6   :  { %55 = vst.msk [vmem:[#allocation3] sm:$0xff] %vm30_vm0, %v54_v36 }
 0x1d7   :  { %v88_v41 = vadd.f32 %v87_v38, %v80_v39 }
 0x1d8   :  { %v141_v40 = vpop.eup %140 }
 0x1d9   :  { %v95_v42 = vmul.f32 0.6931472, %v141_v40 }
 0x1db   :  { %v96_v43 = vadd.f32 %v95_v42, %v88_v41 }
 0x1dd   :  { %v98_v45 = vadd.f32 %v97_v44, %v96_v43 }
 0x1df   :  { %v99_v46 = vsub.f32 %v98_v45, %v64_v30 }
 0x1e1   :  { %102 = vperm.xlu1 %129, %v99_v46  }
 0x260   :  { %v103_v47 = vpop.permute.xlu1 %102 }
 0x261   :  { %105 = vst [vmem:[#allocation7] sm:$0xff] %v103_v47 }
 0x262   :  { %175 = shalt.err (!%p172_p12)
}
 0x263   :  { %s176_s22 = scalar_lea.hbm %s234_s1, 128 }
 0x264   :  { %p177_p13 = scmp.ne.s32.totalorder %s234_s1, %s176_s22  ;;  %p180_p0 = scmp.lt.u32.totalorder %s176_s22, %s234_s1 }
 0x266   :  { %p182_p1 = pnand %p180_p0, %p177_p13 }
 0x268   :  { %185 = shalt.err (!%p182_p1)
}
 0x269   :  { %115 = dma.vmem_to_hbm [thread:$0]  %s113_s18, 128, %s234_s1, [#allocation6]  }
 0x26a   :  { %188 = dma.done.wait [#allocation6], 128  }
 0x26b   :  { %189 = vsyncadd [#allocation6], 4294967168 }
 0x26c   :  { %119 = vsyncpa [#allocation5], 1 }
 0x26d   :  { %120 = vsyncpa [#allocation6], 1 }

</bundles_post_ra>
